<compile_context>
chip_gen: v6e
topology: v6e:2x2x1
jax: 0.10.0
libtpu: 0.0.40
codegen_flags: <defaults>
</compile_context>

<pallas_src>
import functools

import numpy as np
import jax
import jax.numpy as jnp
from jax import lax
from jax.experimental import pallas as pl
from jax.experimental.pallas import tpu as pltpu


def _round_up(x, m):
    return ((x + m - 1) // m) * m


def _cdiv(a, b):
    return (a + b - 1) // b


# ------------------------------- kernel bodies --------------------------------
def _pmf_log(a_t, m_out, const_inverse_softmax):
    """a_t: (2M, blk) f32 with the batch on the lane axis. Returns log-PMF (M, blk)."""
    a_re = a_t[:m_out, :]            # sublane-aligned split: no mid-lane shuffles
    a_im = a_t[m_out:, :]
    sq = a_re * a_re + a_im * a_im                       # |A(t_m)|^2, lane-dense
    norm = jnp.sum(sq, axis=0, keepdims=True)            # per-batch-element sum, (1, blk)
    norm = jnp.maximum(norm, 1e-30)                      # defensive: garbage lanes of a
                                                         # ragged last block stay finite-ish
    inv = pl.reciprocal(norm, approx=True)               # EUP slot
    inv = inv * (2.0 - norm * inv)                       # one Newton step -> f32 accuracy
    return jnp.log(sq * inv + const_inverse_softmax)     # lane-dense log (EUP)


def _fourier_head_fused_kernel(x_ref, w_eff_t_ref, be_t_ref, out_ref, *,
                               m_out, const_inverse_softmax):
    # Single MXU contraction: a^T = W_eff^T @ x^T  (batch lands on the lane axis).
    a_t = lax.dot_general(w_eff_t_ref[...], x_ref[...],
                          dimension_numbers=(((1,), (1,)), ((), ())),
                          preferred_element_type=jnp.float32)
    a_t = a_t + be_t_ref[...]                            # bias folded through the basis
    out_ref[...] = _pmf_log(a_t, m_out, const_inverse_softmax)


def _fourier_head_split_kernel(x_ref, w_ref, basis_t_ref, be_t_ref, out_ref, *,
                               m_out, const_inverse_softmax):
    # Two-matmul path, used only when both dim_input and 2M are large (>128),
    # where pre-fusing W_eff would inflate FLOPs.
    p_t = lax.dot_general(w_ref[...], x_ref[...],
                          dimension_numbers=(((1,), (1,)), ((), ())),
                          preferred_element_type=jnp.float32)          # (2L, blk)
    a_t = jnp.dot(basis_t_ref[...], p_t,
                  preferred_element_type=jnp.float32) + be_t_ref[...]  # (2M, blk)
    out_ref[...] = _pmf_log(a_t, m_out, const_inverse_softmax)


# --------------------------------- wrapper ------------------------------------
def fourier_head_forward(x, weight, bias, bin_centerpoints, num_frequencies,
                         const_inverse_softmax=1e-5, block_b=1024,
                         matmul_dtype=jnp.bfloat16):
    """Forward pass of Fourier_Head.

    x: (..., dim_input); weight: (2*(F+1), dim_input); bias: (2*(F+1),);
    bin_centerpoints: (dim_output,).  Returns (..., dim_output) inverse-softmax logits.

    matmul_dtype controls the MXU operand precision (bf16 halves the dominant x
    stream and uses the native bf16 MXU path; accumulation and all post-matmul
    elementwise work stay f32).  Pass jnp.float32 for bit-tight validation.
    """
    shape_in = x.shape
    dim_input = int(shape_in[-1])
    F = int(num_frequencies)
    L = F + 1
    two_l = 2 * L
    M = int(bin_centerpoints.shape[0])
    two_m = 2 * M

    xb = x.reshape(-1, dim_input)
    B = int(xb.shape[0])

    # ---- tiny glue: trig basis E (2L, 2M) with [Re A(t_m) | Im A(t_m)] = p @ E ----
    t = bin_centerpoints.astype(jnp.float32)[None, :]                  # (1, M)
    j = jnp.arange(L, dtype=jnp.float32)[:, None]                      # (L, 1)
    ang = jnp.pi * j * t                                               # (L, M)
    cos_jm, sin_jm = jnp.cos(ang), jnp.sin(ang)
    basis = jnp.concatenate(
        [jnp.concatenate([cos_jm, sin_jm], axis=1),                    # rows for Re(a_j)
         jnp.concatenate([-sin_jm, cos_jm], axis=1)], axis=0)          # rows for Im(a_j)
    w_f32 = weight.astype(jnp.float32)
    be_t = (bias.astype(jnp.float32) @ basis).reshape(two_m, 1)        # (2M, 1), f32

    # Fuse the two matmuls whenever it is cheap (small dims pad to 128 lanes anyway).
    fuse = (two_l <= 128) and (dim_input <= 128 or two_m <= 128)

    xb = xb.astype(matmul_dtype)
    in_bytes = jnp.dtype(matmul_dtype).itemsize

    # ---- batch-tile selection: lane-dense tiles (multiples of 128) ----------------
    blk = max(128, _round_up(int(block_b), 128))
    if B > 128:
        # v7x has 2 TensorCores: keep >= 2 grid steps so "parallel" can shard them.
        blk = min(blk, _round_up(_cdiv(B, 2), 128))

    def est_bytes(b):
        def lane(n): return _round_up(max(int(n), 1), 128)
        def sub(n): return _round_up(max(int(n), 1), 8)
        x_tile = 2 * sub(b) * lane(dim_input) * in_bytes               # double-buffered
        o_tile = 2 * sub(M) * lane(b) * 4
        if fuse:
            consts = (2 * sub(two_m) * lane(dim_input) * in_bytes
                      + 2 * sub(two_m) * 128 * 4)
        else:
            consts = (2 * sub(two_l) * lane(dim_input) * in_bytes
                      + 2 * sub(two_m) * lane(two_l) * 4
                      + 2 * sub(two_m) * 128 * 4)
        interm = 4 * sub(two_m) * lane(b) * 4                          # a_t / sq / pmf
        return x_tile + o_tile + consts + interm

    # Keep the footprint modest (v7x has only 64 MiB physical VMEM).
    while blk > 128 and est_bytes(blk) > (14 << 20):
        blk = max(128, _round_up(blk // 2, 128))
    # TODO(synk): for dim_input >~ 8K add an "arbitrary" reduction grid axis over
    #             dim_input with a VMEM accumulator instead of shrinking blk here.

    if B <= blk:
        blk = B                      # single block == full array dims (any B allowed)
    grid = (_cdiv(B, blk),)

    # vmem_limit: only raise above the conservative cross-generation default when the
    # real (double-buffered) estimate actually needs it; never a blanket 32/48 MiB ask.
    needed = 2 * est_bytes(blk) + (4 << 20)
    cp_kwargs = dict(dimension_semantics=("parallel",))
    if needed > (16 << 20):
        cp_kwargs["vmem_limit_bytes"] = int(min(needed, 56 << 20))
    compiler_params = pltpu.CompilerParams(**cp_kwargs)

    kernel_kwargs = dict(m_out=M, const_inverse_softmax=float(const_inverse_softmax))
    x_spec = pl.BlockSpec((blk, dim_input), lambda i: (i, 0))
    be_spec = pl.BlockSpec((two_m, 1), lambda i: (0, 0))
    out_spec = pl.BlockSpec((M, blk), lambda i: (0, i))                # batch on lanes

    if fuse:
        w_eff_t = (basis.T @ w_f32).astype(matmul_dtype)               # (2M, dim_input)
        kernel = functools.partial(_fourier_head_fused_kernel, **kernel_kwargs)
        in_specs = [x_spec,
                    pl.BlockSpec((two_m, dim_input), lambda i: (0, 0)),
                    be_spec]
        operands = (xb, w_eff_t, be_t)
    else:
        kernel = functools.partial(_fourier_head_split_kernel, **kernel_kwargs)
        in_specs = [x_spec,
                    pl.BlockSpec((two_l, dim_input), lambda i: (0, 0)),
                    pl.BlockSpec((two_m, two_l), lambda i: (0, 0)),
                    be_spec]
        operands = (xb, w_f32.astype(matmul_dtype), basis.T, be_t)

    out_t = pl.pallas_call(
        kernel,
        out_shape=jax.ShapeDtypeStruct((M, B), jnp.float32),
        grid_spec=pltpu.PrefetchScalarGridSpec(
            num_scalar_prefetch=0,
            grid=grid,
            in_specs=in_specs,
            out_specs=out_spec),
        compiler_params=compiler_params,
    )(*operands)

    # Layout plumbing back to the module's batch-major (..., dim_output) output.
    return out_t.T.reshape(shape_in[:-1] + (M,))


# ----------------------------- pure-JAX references -----------------------------
def fourier_head_ref(x, weight, bias, bin_centerpoints, num_frequencies,
                     const_inverse_softmax=1e-5):
    """Faithful port of the PyTorch module (complex autocorrelation path)."""
    F = num_frequencies
    L = F + 1
    shape_in = x.shape
    xb = x.reshape(-1, shape_in[-1]).astype(jnp.float32)
    p = xb @ weight.T + bias
    a = p[:, :L].astype(jnp.complex64) + 1j * p[:, L:2 * L].astype(jnp.complex64)
    cols = [jnp.sum(jnp.conj(a[:, :L - k]) * a[:, k:], axis=-1) for k in range(L)]
    c = jnp.stack(cols, axis=-1)                          # (B, F+1)
    cn = c[:, 1:] / c[:, 0:1].real                        # (B, F)
    freqs = 1j * jnp.arange(1, F + 1) * jnp.pi            # (F,)
    ev = jnp.exp(bin_centerpoints[None, :, None] * freqs[None, None, :])  # (1, M, F)
    sl = 0.5 + jnp.real(jnp.sum(cn[:, None, :] * ev, axis=-1))            # (B, M)
    pmf = sl / jnp.sum(sl, axis=-1, keepdims=True)
    out = jnp.log(pmf + const_inverse_softmax)
    return out.reshape(shape_in[:-1] + (bin_centerpoints.shape[0],))


def fourier_head_matched_ref(x, weight, bias, bin_centerpoints, num_frequencies,
                             const_inverse_softmax=1e-5, matmul_dtype=jnp.float32):
    """Pure-JAX mirror of the kernel's reformulated dataflow (same operand rounding and
    MXU orientation); used to validate the reduced-precision bf16 path bin-by-bin."""
    F = int(num_frequencies)
    L = F + 1
    M = int(bin_centerpoints.shape[0])
    shape_in = x.shape
    xb = x.reshape(-1, shape_in[-1]).astype(matmul_dtype)
    t = bin_centerpoints.astype(jnp.float32)[None, :]
    j = jnp.arange(L, dtype=jnp.float32)[:, None]
    ang = jnp.pi * j * t
    cos_jm, sin_jm = jnp.cos(ang), jnp.sin(ang)
    basis = jnp.concatenate(
        [jnp.concatenate([cos_jm, sin_jm], axis=1),
         jnp.concatenate([-sin_jm, cos_jm], axis=1)], axis=0)
    w_eff_t = (basis.T @ weight.astype(jnp.float32)).astype(matmul_dtype)   # (2M, Din)
    be_t = (bias.astype(jnp.float32) @ basis).reshape(2 * M, 1)
    a_t = lax.dot_general(w_eff_t, xb, (((1,), (1,)), ((), ())),
                          preferred_element_type=jnp.float32) + be_t        # (2M, B)
    sq = a_t[:M, :] ** 2 + a_t[M:, :] ** 2
    pmf = sq / jnp.sum(sq, axis=0, keepdims=True)
    out = jnp.log(pmf + const_inverse_softmax)
    return out.T.reshape(shape_in[:-1] + (M,))


# ----------------------------------- test --------------------------------------
def _make_params(key, dim_input, num_frequencies):
    k1, k2 = jax.random.split(key)
    bound = 1.0 / float(np.sqrt(dim_input))
    # Mimics nn.Linear uniform init, divided by init_denominator_{weight,bias}=100.
    weight = jax.random.uniform(k1, (2 * (num_frequencies + 1), dim_input),
                                minval=-bound, maxval=bound, dtype=jnp.float32) / 100.0
    bias = jax.random.uniform(k2, (2 * (num_frequencies + 1),),
                              minval=-bound, maxval=bound, dtype=jnp.float32) / 100.0
    return weight, bias


if __name__ == "__main__":
    root = jax.random.PRNGKey(0)
    cases = [
        # (name, batch_dims, dim_input, dim_output, num_frequencies, also_bf16)
        ("small-fused",  (2, 8),  32, 16, 8, True),    # single block == full array dims
        ("ragged-fused", (300,),  32, 16, 8, True),    # two 128-wide lane tiles + ragged tail
        ("large-split",  (160,), 256, 128, 8, False),  # two-matmul path (big Din and 2M)
    ]

    for idx, (name, batch_dims, dim_input, dim_output, F, also_bf16) in enumerate(cases):
        kp, kx = jax.random.split(jax.random.fold_in(root, idx))
        weight, bias = _make_params(kp, dim_input, F)
        bin_edges = jnp.linspace(-1.0, 1.0, dim_output + 1)
        bin_centerpoints = (bin_edges[:-1] + bin_edges[1:]) / 2.0
        x = jax.random.normal(kx, batch_dims + (dim_input,), dtype=jnp.float32)

        ref = np.asarray(jax.block_until_ready(
            fourier_head_ref(x, weight, bias, bin_centerpoints, F)))

        # Exact path: f32 MXU operands, compared against the faithful torch port.
        out_f32 = np.asarray(jax.block_until_ready(
            fourier_head_forward(x, weight, bias, bin_centerpoints, F,
                                 matmul_dtype=jnp.float32)))
        assert out_f32.shape == batch_dims + (dim_output,), (name, out_f32.shape)
        np.testing.assert_allclose(out_f32, ref, rtol=1e-3, atol=2e-3,
                                   err_msg=f"f32 path mismatch ({name})")

        if also_bf16:
            # Throughput path: bf16 MXU operands / f32 accumulation, compared against
            # a pure-JAX reference using the identical operand rounding.
            out_bf16 = np.asarray(jax.block_until_ready(
                fourier_head_forward(x, weight, bias, bin_centerpoints, F,
                                     matmul_dtype=jnp.bfloat16)))
            ref_bf16 = np.asarray(jax.block_until_ready(
                fourier_head_matched_ref(x, weight, bias, bin_centerpoints, F,
                                         matmul_dtype=jnp.bfloat16)))
            np.testing.assert_allclose(out_bf16, ref_bf16, rtol=1e-3, atol=5e-3,
                                       err_msg=f"bf16 path mismatch ({name})")

    print("KERNEL_OK")
</pallas_src>

<mosaic_0001>
module attributes {stable_mosaic.version = 11 : i64} {
  func.func @_fourier_head_fused_kernel(%arg0: i32, %arg1: memref<16x32xf32, #tpu.memory_space<vmem>>, %arg2: memref<32x32xf32, #tpu.memory_space<vmem>>, %arg3: memref<32x1xf32, #tpu.memory_space<vmem>>, %arg4: memref<16x16xf32, #tpu.memory_space<vmem>>) attributes {dimension_semantics = [#tpu.dimension_semantics<parallel>], iteration_bounds = array<i64: 1>, scalar_prefetch = 0 : i64, scratch_operands = 0 : i64, tpu.core_type = #tpu.core_type<tc>, window_params = [{transform_indices = @transform_0, window_bounds = array<i64: 16, 32>}, {pipeline_mode = #tpu.pipeline_mode<synchronous>, transform_indices = @transform_1, window_bounds = array<i64: 32, 32>}, {pipeline_mode = #tpu.pipeline_mode<synchronous>, transform_indices = @transform_2, window_bounds = array<i64: 32, 1>}, {transform_indices = @transform_3, window_bounds = array<i64: 16, 16>}]} {
    %c0 = arith.constant 0 : index
    %c0_0 = arith.constant 0 : index
    %0 = vector.load %arg2[%c0, %c0_0] : memref<32x32xf32, #tpu.memory_space<vmem>>, vector<32x32xf32>
    %c0_1 = arith.constant 0 : index
    %c0_2 = arith.constant 0 : index
    %1 = vector.load %arg1[%c0_1, %c0_2] : memref<16x32xf32, #tpu.memory_space<vmem>>, vector<16x32xf32>
    %cst = arith.constant dense<0.000000e+00> : vector<32x16xf32>
    %2 = tpu.matmul %0, %1, %cst {dimension_numbers = #tpu.dot_dimension_numbers<[1], [1], [0], [0], [0, 0, 1, 0], [], []>} : vector<32x32xf32>, vector<16x32xf32>, vector<32x16xf32> -> vector<32x16xf32>
    %c0_3 = arith.constant 0 : index
    %c0_4 = arith.constant 0 : index
    %3 = vector.load %arg3[%c0_3, %c0_4] : memref<32x1xf32, #tpu.memory_space<vmem>>, vector<32x1xf32>
    %4 = vector.broadcast %3 : vector<32x1xf32> to vector<32x16xf32>
    %5 = arith.addf %2, %4 : vector<32x16xf32>
    %6 = vector.extract_strided_slice %5 {offsets = [0, 0], sizes = [16, 16], strides = [1, 1]} : vector<32x16xf32> to vector<16x16xf32>
    %7 = vector.extract_strided_slice %5 {offsets = [16, 0], sizes = [16, 16], strides = [1, 1]} : vector<32x16xf32> to vector<16x16xf32>
    %8 = arith.mulf %6, %6 : vector<16x16xf32>
    %9 = arith.mulf %7, %7 : vector<16x16xf32>
    %10 = arith.addf %8, %9 : vector<16x16xf32>
    %cst_5 = arith.constant dense<0.000000e+00> : vector<16xf32>
    %11 = vector.multi_reduction <add>, %10, %cst_5 [0] : vector<16x16xf32> to vector<16xf32>
    %12 = vector.shape_cast %11 : vector<16xf32> to vector<1x16xf32>
    %cst_6 = arith.constant 1.000000e-30 : f32
    %13 = vector.broadcast %cst_6 : f32 to vector<1x16xf32>
    %14 = arith.maximumf %12, %13 : vector<1x16xf32>
    %15 = tpu.reciprocal %14 {approx = true} : vector<1x16xf32> -> vector<1x16xf32>
    %16 = arith.mulf %14, %15 : vector<1x16xf32>
    %cst_7 = arith.constant 2.000000e+00 : f32
    %17 = vector.broadcast %cst_7 : f32 to vector<1x16xf32>
    %18 = arith.subf %17, %16 : vector<1x16xf32>
    %19 = arith.mulf %15, %18 : vector<1x16xf32>
    %20 = vector.broadcast %19 : vector<1x16xf32> to vector<16x16xf32>
    %21 = arith.mulf %10, %20 : vector<16x16xf32>
    %cst_8 = arith.constant 9.99999974E-6 : f32
    %22 = vector.broadcast %cst_8 : f32 to vector<16x16xf32>
    %23 = arith.addf %21, %22 : vector<16x16xf32>
    %24 = math.log %23 : vector<16x16xf32>
    %c0_9 = arith.constant 0 : index
    %c0_10 = arith.constant 0 : index
    %25 = vector.load %arg4[%c0_9, %c0_10] : memref<16x16xf32, #tpu.memory_space<vmem>>, vector<16x16xf32>
    tpu.vector_store %arg4[%c0_9, %c0_10], %24 {strides = array<i32>} : memref<16x16xf32, #tpu.memory_space<vmem>>, vector<16x16xf32>,
    return
  }
  func.func @transform_0(%arg0: i32) -> (i32, i32) {
    %c0_i32 = arith.constant 0 : i32
    %c0_i32_0 = arith.constant 0 : i32
    return %arg0, %c0_i32 : i32, i32
  }
  func.func @transform_1(%arg0: i32) -> (i32, i32) {
    %c0_i32 = arith.constant 0 : i32
    %c0_i32_0 = arith.constant 0 : i32
    %c0_i32_1 = arith.constant 0 : i32
    return %c0_i32, %c0_i32_0 : i32, i32
  }
  func.func @transform_2(%arg0: i32) -> (i32, i32) {
    %c0_i32 = arith.constant 0 : i32
    %c0_i32_0 = arith.constant 0 : i32
    %c0_i32_1 = arith.constant 0 : i32
    return %c0_i32, %c0_i32_0 : i32, i32
  }
  func.func @transform_3(%arg0: i32) -> (i32, i32) {
    %c0_i32 = arith.constant 0 : i32
    %c0_i32_0 = arith.constant 0 : i32
    return %c0_i32, %arg0 : i32, i32
  }
}

</mosaic_0001>

<bundles_post_ra>
// kernel: tpu_custom_call.1
= control target key start
LH: loop header
LB: loop body
LE: loop exit
PB: predicated region body
PF: predicated region fallthrough
CT: control target
= control target key end

     0   :  { %8 = vsyncpa [#allocation3], 0  ;;  %s371_s0 = inlined_call_operand.hbm [shape: f32[16,32], index: 0, kind: input, shape index: {}]   ;;  %s372_s1 = inlined_call_operand.vmem [shape: f32[32,32], index: 1, kind: input, shape index: {}]   ;;  %s373_s2 = inlined_call_operand.vmem [shape: f32[32,1], index: 2, kind: input, shape index: {}]   ;;  %s374_s3 = inlined_call_operand.hbm [shape: f32[16,16], index: 3, kind: output, shape index: {}]  }
   0x1   :  { %9 = vsyncpa [#allocation4], 0  ;;  %s294_s12 = smov [#allocation2]  }
   0x2   :  { %s15_s13 = sshll.u32 %s294_s12, 4  ;;  %s16_s13 = int_to_ptr.vmem [resolvable:$true] %s15_s13 }
   0x3   :  { %s258_s14 = scalar_lea.vmem %s16_s13, 256  ;;  %p263_p1 = scmp.lt.s32.totalorder %s16_s13, %s16_s13 }
   0x4   :  { %p259_p0 = scmp.ne.s32.totalorder %s16_s13, %s258_s14  ;;  %p264_p2 = scmp.lt.s32.totalorder %s258_s14, %s258_s14 }
   0x6   :  { %p265_p3 = por %p264_p2, %p263_p1 }
   0x8   :  { %p266_p4 = pnand %p265_p3, %p259_p0 }
   0xa   :  { %269 = shalt.err (!%p266_p4)
}
   0xb   :  { %s295_s15 = smov 128   ;;  %s296_s16 = smov 8  }
   0xc   :  { %21 = dma.hbm_to_vmem [thread:$0]  %s371_s0, 256, %s16_s13, [#allocation3], %s295_s15, %s295_s15, %s296_s16  }
   0xd   :  { %290 = dma.done.wait [#allocation3], 256  }
   0xe   :  { %291 = vsyncadd [#allocation3], 4294967040  ;;  %v297_v0 = vmov 0   ;;  %vm59_vm0 = vcmask 261120   ;;  %v34_v1 = vld [vmem:[#allocation2 + $0x8] sm:$0xff]  ;;  %v33_v2 = vld [vmem:[#allocation2] sm:$0xff] }
   0xf   :  { %243 = vset.pattern.permute.xlu1 %v297_v0  ;;  %242 = vset.pattern.permute.xlu0 %v297_v0  ;;  %v29_v3 = vld [vmem:[%s372_s1] sm:$0xff]  ;;  %v31_v4 = vld [vmem:[%s372_s1 + $0x10] sm:$0xff]  ;;  %v30_v7 = vld [vmem:[%s372_s1 + $0x8] sm:$0xff]  ;;  %vm169_vm1 = vcmask 130048  }
  0x10   :  { %223 = vmatprep.subr.msk.mxu0 %vm59_vm0, %v34_v1  ;;  %233 = vmatprep.subr.msk.mxu1 %vm59_vm0, %v34_v1  ;;  %v37_v5 = vld [vmem:[%s373_s2 + $0x10] sm:$0xff]  ;;  %v35_v6 = vld [vmem:[%s373_s2] sm:$0xff]  ;;  %v32_v8 = vld [vmem:[%s372_s1 + $0x18] sm:$0xff]  ;;  %s298_s1 = smov [#allocation5]  }
  0x11   :  { %224 = vmatpush3.xpose.msk.msra.mxu0 %vm59_vm0, %v34_v1  ;;  %235 = vmatpush3.xpose.msk.msra.mxu1 %vm59_vm0, %v34_v1  ;;  %v38_v9 = vld [vmem:[%s373_s2 + $0x18] sm:$0xff]  ;;  %v36_v10 = vld [vmem:[%s373_s2 + $0x8] sm:$0xff]  ;;  %s199_s2 = sshll.u32 %s298_s1, 4  ;;  %s200_s2 = int_to_ptr.vmem [resolvable:$true] %s199_s2 }
  0x12   :  { %225 = vmatprep.subr.msk.mxu0 %vm59_vm0, %v33_v2  ;;  %234 = vmatprep.subr.msk.mxu1 %vm59_vm0, %v33_v2  ;;  %s270_s7 = scalar_lea.vmem %s200_s2, 256  ;;  %p275_p6 = scmp.lt.s32.totalorder %s200_s2, %s200_s2 }
  0x13   :  { %227 = vmatprep.mubr.msk.f32.mxu0 %vm59_vm0, %v29_v3  ;;  %230 = vmatprep.mubr.msk.f32.mxu1 %vm59_vm0, %v31_v4  ;;  %p271_p5 = scmp.ne.s32.totalorder %s200_s2, %s270_s7  ;;  %p276_p7 = scmp.lt.s32.totalorder %s270_s7, %s270_s7 }
  0x14   :  { %51 = vperm.xlu1 %243, %v37_v5   ;;  %41 = vperm.xlu0 %242, %v35_v6  }
  0x15   :  { %226 = vmatpush3.xpose.msk.msra.mxu0 %vm59_vm0, %v33_v2  ;;  %236 = vmatpush3.xpose.msk.msra.mxu1 %vm59_vm0, %v33_v2  ;;  %p277_p8 = por %p276_p7, %p275_p6 }
  0x17   :  { %p278_p9 = pnand %p277_p8, %p271_p5 }
  0x18   :  { %228 = vmatmul.mubr.msk.f32.vlgmr.msra.gmra.mxu0 %vm59_vm0, %v30_v7  ;;  %231 = vmatmul.mubr.msk.f32.vlgmr.msra.gmra.mxu1 %vm59_vm0, %v32_v8 }
  0x19   :  { %56 = vperm.xlu1 %243, %v38_v9   ;;  %46 = vperm.xlu0 %242, %v36_v10  }
  0x8f   :  { %v52_v11 = vpop.permute.xlu1 %51  ;;  %v42_v12 = vpop.permute.xlu0 %41 }
  0x94   :  { %v57_v13 = vpop.permute.xlu1 %56  ;;  %v47_v14 = vpop.permute.xlu0 %46 }
  0xd8   :  { %v229_v15 = vpop.f32.mrf.mxu0  ;;  %v232_v16 = vpop.f32.mrf.mxu1 }
  0xd9   :  { %v150_v17 = vadd.f32 %v229_v15, %v47_v14  ;;  %v160_v18 = vadd.f32 %v232_v16, %v57_v13 }
  0xda   :  { %v144_v19 = vpop.f32.mrf.mxu0  ;;  %v154_v20 = vpop.f32.mrf.mxu1 }
  0xdb   :  { %v164_v21 = vmul.f32 %v150_v17, %v150_v17  ;;  %v166_v22 = vmul.f32 %v160_v18, %v160_v18  ;;  %v145_v23 = vadd.f32 %v144_v19, %v42_v12  ;;  %v155_v24 = vadd.f32 %v154_v20, %v52_v11 }
  0xdd   :  { %v168_v25 = vadd.f32 %v166_v22, %v164_v21  ;;  %v163_v26 = vmul.f32 %v145_v23, %v145_v23  ;;  %v165_v27 = vmul.f32 %v155_v24, %v155_v24 }
  0xdf   :  { %v167_v28 = vadd.f32 %v165_v27, %v163_v26  ;;  %v171_v29 = vsel %vm169_vm1, %v168_v25, 0.0 }
  0xe1   :  { %v170_v30 = vsel %vm169_vm1, %v167_v28, 0.0 }
  0xe2   :  { %v172_v31 = vadd.f32 %v171_v29, %v170_v30 }
  0xe4   :  { %v173_v32 = vrot.slane %v172_v31, 4 }
  0xe6   :  { %v174_v33 = vadd.f32 %v173_v32, %v172_v31 }
  0xe8   :  { %v175_v34 = vrot.slane %v174_v33, 2 }
  0xea   :  { %v176_v35 = vadd.f32 %v175_v34, %v174_v33 }
  0xec   :  { %v177_v36 = vrot.slane %v176_v35, 1 }
  0xee   :  { %v178_v37 = vadd.f32 %v177_v36, %v176_v35 }
  0xf0   :  { %v179_v38 = vmax.f32 %v178_v37, 1e-30 }
  0xf2   :  { %244 = vrcp.f32 %v179_v38 }
  0xff   :  { %v245_v39 = vpop.eup %244 }
 0x100   :  { %v181_v40 = vmul.f32 %v245_v39, %v179_v38 }
 0x102   :  { %v182_v41 = vsub.f32 2.0, %v181_v40 }
 0x104   :  { %v183_v42 = vmul.f32 %v245_v39, %v182_v41 }
 0x106   :  { %v184_v43 = vmul.f32 %v183_v42, %v167_v28  ;;  %v185_v44 = vmul.f32 %v183_v42, %v168_v25 }
 0x108   :  { %v186_v45 = vadd.f32 1e-05, %v184_v43  ;;  %v187_v46 = vadd.f32 1e-05, %v185_v44 }
 0x10a   :  { %246 = vlog2.f32 %v186_v45 }
 0x10b   :  { %248 = vlog2.f32 %v187_v46 }
 0x117   :  { %v247_v47 = vpop.eup %246 }
 0x118   :  { %v249_v48 = vpop.eup %248  ;;  %v189_v49 = vmul.f32 0.6931472, %v247_v47 }
 0x119   :  { %v191_v50 = vmul.f32 0.6931472, %v249_v48 }
 0x11a   :  { %192 = vst.msk [vmem:[#allocation5] sm:$0xff] %vm169_vm1, %v189_v49 }
 0x11b   :  { %193 = vst.msk [vmem:[#allocation5 + $0x8] sm:$0xff] %vm169_vm1, %v191_v50 }
 0x11c   :  { %281 = shalt.err (!%p278_p9)
}
 0x11d   :  { %205 = dma.vmem_to_hbm [thread:$0]  %s200_s2, 256, %s374_s3, [#allocation4], %s295_s15, %s295_s15, %s296_s16  }
 0x11e   :  { %292 = dma.done.wait [#allocation4], 256  }
 0x11f   :  { %293 = vsyncadd [#allocation4], 4294967040 }
 0x120   :  { %209 = vsyncpa [#allocation3], 1 }
 0x121   :  { %210 = vsyncpa [#allocation4], 1 }

</bundles_post_ra>
